<compile_context>
chip_gen: v7x
topology: tpu7x:2x2x1
jax: 0.10.0
libtpu: 0.0.40
codegen_flags: <defaults>
</compile_context>

<pallas_src>
import functools

import jax
import jax.numpy as jnp
from jax.experimental import pallas as pl
from jax.experimental.pallas import tpu as pltpu

DROPOUT_P = 0.2
N_EMBD_DEFAULT = 384  # module default; the demo below uses a smaller n_embd


def _ffwd_eval_kernel(x_ref, w1_ref, b1_ref, w2_ref, b2_ref, o_ref,
                      *, compute_dtype):
    # x_ref: (tm, C) f32, w1_ref: (C, H) compute_dtype, b1_ref: (1, H) f32,
    # w2_ref: (H, C) compute_dtype, b2_ref: (1, C) f32, o_ref: (tm, C) f32.
    x = x_ref[...].astype(compute_dtype)
    h = jnp.dot(x, w1_ref[...], preferred_element_type=jnp.float32)
    h = jnp.maximum(h + b1_ref[...], 0.0)               # bias + ReLU in f32
    y = jnp.dot(h.astype(compute_dtype), w2_ref[...],
                preferred_element_type=jnp.float32)
    y = y + b2_ref[...]
    o_ref[...] = y.astype(o_ref.dtype)


def _ffwd_train_kernel(x_ref, w1_ref, b1_ref, w2_ref, b2_ref, rnd_ref, o_ref,
                       *, compute_dtype, keep_prob, keep_threshold):
    x = x_ref[...].astype(compute_dtype)
    h = jnp.dot(x, w1_ref[...], preferred_element_type=jnp.float32)
    h = jnp.maximum(h + b1_ref[...], 0.0)
    y = jnp.dot(h.astype(compute_dtype), w2_ref[...],
                preferred_element_type=jnp.float32)
    y = y + b2_ref[...]
    # Inverted dropout via integer-threshold compare on raw uint32 bits.
    keep = rnd_ref[...] < jnp.uint32(keep_threshold)
    y = jnp.where(keep, y * (1.0 / keep_prob), 0.0)
    o_ref[...] = y.astype(o_ref.dtype)


def _choose_row_tile(m):
    """Large row tiles (up to 512) but keep >=2 grid steps when possible."""
    if m >= 1024:
        return 512
    half = pl.cdiv(m, 2)
    tm = ((half + 7) // 8) * 8      # sublane-aligned
    return max(8, min(tm, 512))


def feed_forward(x, w1, b1, w2, b2, *, training=False, rng_key=None,
                 dropout_p=DROPOUT_P, compute_dtype=jnp.bfloat16):
    """x: (B, T, C) float32.  Returns (B, T, C) float32."""
    B, T, C = x.shape
    H = w1.shape[1]
    assert w1.shape == (C, H) and w2.shape == (H, C)

    M = B * T
    x2d = x.reshape(M, C)
    w1c = w1.astype(compute_dtype)
    w2c = w2.astype(compute_dtype)
    b1_2d = b1.reshape(1, H).astype(jnp.float32)
    b2_2d = b2.reshape(1, C).astype(jnp.float32)

    tm = _choose_row_tile(M)
    grid_m = pl.cdiv(M, tm)
    m_pad = grid_m * tm
    if m_pad != M:
        x2d = jnp.pad(x2d, ((0, m_pad - M), (0, 0)))

    row_spec = pl.BlockSpec((tm, C), lambda i: (i, 0))
    weight_specs = [
        pl.BlockSpec((C, H), lambda i: (0, 0)),   # w1 (grid-invariant, whole)
        pl.BlockSpec((1, H), lambda i: (0, 0)),   # b1
        pl.BlockSpec((H, C), lambda i: (0, 0)),   # w2
        pl.BlockSpec((1, C), lambda i: (0, 0)),   # b2
    ]
    compiler_params = pltpu.CompilerParams(
        dimension_semantics=("parallel",),
        vmem_limit_bytes=64 * 1024 * 1024,
    )

    use_dropout = bool(training) and dropout_p > 0.0
    if use_dropout:
        if rng_key is None:
            rng_key = jax.random.PRNGKey(0)
        keep_prob = 1.0 - float(dropout_p)
        keep_threshold = min(int(round(keep_prob * (1 << 32))), (1 << 32) - 1)
        rnd = jax.random.bits(rng_key, (m_pad, C), dtype=jnp.uint32)
        kernel = functools.partial(_ffwd_train_kernel,
                                   compute_dtype=compute_dtype,
                                   keep_prob=keep_prob,
                                   keep_threshold=keep_threshold)
        out2d = pl.pallas_call(
            kernel,
            out_shape=jax.ShapeDtypeStruct((m_pad, C), x.dtype),
            grid=(grid_m,),
            in_specs=[row_spec, *weight_specs, row_spec],
            out_specs=row_spec,
            compiler_params=compiler_params,
        )(x2d, w1c, b1_2d, w2c, b2_2d, rnd)
    else:
        kernel = functools.partial(_ffwd_eval_kernel,
                                   compute_dtype=compute_dtype)
        out2d = pl.pallas_call(
            kernel,
            out_shape=jax.ShapeDtypeStruct((m_pad, C), x.dtype),
            grid=(grid_m,),
            in_specs=[row_spec, *weight_specs],
            out_specs=row_spec,
            compiler_params=compiler_params,
        )(x2d, w1c, b1_2d, w2c, b2_2d)

    return out2d[:M].reshape(B, T, C)


def init_params(key, n_embd):
    """Deterministic init mirroring nn.Linear's U(-1/sqrt(fan_in), 1/sqrt(fan_in))."""
    h = 4 * n_embd
    k1, k2, k3, k4 = jax.random.split(key, 4)
    lim1 = 1.0 / (n_embd ** 0.5)
    lim2 = 1.0 / (h ** 0.5)
    w1 = jax.random.uniform(k1, (n_embd, h), jnp.float32, -lim1, lim1)
    b1 = jax.random.uniform(k2, (h,), jnp.float32, -lim1, lim1)
    w2 = jax.random.uniform(k3, (h, n_embd), jnp.float32, -lim2, lim2)
    b2 = jax.random.uniform(k4, (n_embd,), jnp.float32, -lim2, lim2)
    return w1, b1, w2, b2


def feed_forward_ref(x, w1, b1, w2, b2):
    # Pure-JAX reference (eval mode: dropout = identity).
    h = jnp.maximum(x @ w1 + b1, 0.0)
    return h @ w2 + b2


if __name__ == "__main__":
    key = jax.random.PRNGKey(0)
    k_x, k_p = jax.random.split(key)

    # Small, lane-dense shapes consistent with the module: (batch, seq, n_embd).
    B, T, n_embd = 2, 8, 128
    x = jax.random.normal(k_x, (B, T, n_embd), dtype=jnp.float32)
    w1, b1, w2, b2 = init_params(k_p, n_embd)

    ref = feed_forward_ref(x, w1, b1, w2, b2)

    # 1) Eval-mode forward, f32 compute: should match the reference tightly.
    out_f32 = jax.block_until_ready(
        feed_forward(x, w1, b1, w2, b2, training=False,
                     compute_dtype=jnp.float32))
    assert out_f32.shape == (B, T, n_embd)
    assert jnp.allclose(out_f32, ref, atol=1e-5, rtol=1e-5), "f32 mismatch vs reference"

    # 2) Eval-mode forward, default bf16 MXU operands (f32 accumulation).
    out_bf16 = jax.block_until_ready(
        feed_forward(x, w1, b1, w2, b2, training=False))
    assert out_bf16.shape == (B, T, n_embd)
    assert jnp.allclose(out_bf16, ref, atol=5e-2, rtol=5e-2), "bf16 mismatch vs reference"

    # 3) Training-mode forward exercises the fused dropout path.
    out_tr = jax.block_until_ready(
        feed_forward(x, w1, b1, w2, b2, training=True,
                     rng_key=jax.random.PRNGKey(42),
                     compute_dtype=jnp.float32))
    assert out_tr.shape == (B, T, n_embd)
    kept = out_tr != 0.0
    drop_frac = 1.0 - float(jnp.mean(kept.astype(jnp.float32)))
    assert 0.05 < drop_frac < 0.40, f"dropout fraction {drop_frac} out of range"
    scaled_ref = ref / (1.0 - DROPOUT_P)
    assert jnp.allclose(jnp.where(kept, out_tr, 0.0),
                        jnp.where(kept, scaled_ref, 0.0),
                        atol=1e-4, rtol=1e-4), "kept elements not scaled correctly"

    print("KERNEL_OK")
</pallas_src>

<mosaic_0001>
module attributes {stable_mosaic.version = 11 : i64} {
  func.func @_ffwd_eval_kernel(%arg0: i32, %arg1: memref<8x128xf32, #tpu.memory_space<vmem>>, %arg2: memref<128x512xf32, #tpu.memory_space<vmem>>, %arg3: memref<1x512xf32, #tpu.memory_space<vmem>>, %arg4: memref<512x128xf32, #tpu.memory_space<vmem>>, %arg5: memref<1x128xf32, #tpu.memory_space<vmem>>, %arg6: memref<8x128xf32, #tpu.memory_space<vmem>>) attributes {dimension_semantics = [#tpu.dimension_semantics<parallel>], iteration_bounds = array<i64: 2>, scalar_prefetch = 0 : i64, scratch_operands = 0 : i64, tpu.core_type = #tpu.core_type<tc>, window_params = [{transform_indices = @transform_0, window_bounds = array<i64: 8, 128>}, {pipeline_mode = #tpu.pipeline_mode<synchronous>, transform_indices = @transform_1, window_bounds = array<i64: 128, 512>}, {pipeline_mode = #tpu.pipeline_mode<synchronous>, transform_indices = @transform_2, window_bounds = array<i64: 1, 512>}, {pipeline_mode = #tpu.pipeline_mode<synchronous>, transform_indices = @transform_3, window_bounds = array<i64: 512, 128>}, {pipeline_mode = #tpu.pipeline_mode<synchronous>, transform_indices = @transform_4, window_bounds = array<i64: 1, 128>}, {transform_indices = @transform_5, window_bounds = array<i64: 8, 128>}]} {
    %c0 = arith.constant 0 : index
    %c0_0 = arith.constant 0 : index
    %0 = vector.load %arg1[%c0, %c0_0] : memref<8x128xf32, #tpu.memory_space<vmem>>, vector<8x128xf32>
    %c0_1 = arith.constant 0 : index
    %c0_2 = arith.constant 0 : index
    %1 = vector.load %arg2[%c0_1, %c0_2] : memref<128x512xf32, #tpu.memory_space<vmem>>, vector<128x512xf32>
    %cst = arith.constant dense<0.000000e+00> : vector<8x512xf32>
    %2 = tpu.matmul %0, %1, %cst {dimension_numbers = #tpu.dot_dimension_numbers<[1], [0], [0], [1], [0, 0, 1, 1], [], []>} : vector<8x128xf32>, vector<128x512xf32>, vector<8x512xf32> -> vector<8x512xf32>
    %c0_3 = arith.constant 0 : index
    %c0_4 = arith.constant 0 : index
    %3 = vector.load %arg3[%c0_3, %c0_4] : memref<1x512xf32, #tpu.memory_space<vmem>>, vector<1x512xf32>
    %4 = vector.broadcast %3 : vector<1x512xf32> to vector<8x512xf32>
    %5 = arith.addf %2, %4 : vector<8x512xf32>
    %cst_5 = arith.constant 0.000000e+00 : f32
    %6 = vector.broadcast %cst_5 : f32 to vector<8x512xf32>
    %7 = arith.maximumf %5, %6 : vector<8x512xf32>
    %c0_6 = arith.constant 0 : index
    %c0_7 = arith.constant 0 : index
    %8 = vector.load %arg4[%c0_6, %c0_7] : memref<512x128xf32, #tpu.memory_space<vmem>>, vector<512x128xf32>
    %cst_8 = arith.constant dense<0.000000e+00> : vector<8x128xf32>
    %9 = tpu.matmul %7, %8, %cst_8 {dimension_numbers = #tpu.dot_dimension_numbers<[1], [0], [0], [1], [0, 0, 1, 1], [], []>} : vector<8x512xf32>, vector<512x128xf32>, vector<8x128xf32> -> vector<8x128xf32>
    %c0_9 = arith.constant 0 : index
    %c0_10 = arith.constant 0 : index
    %10 = vector.load %arg5[%c0_9, %c0_10] : memref<1x128xf32, #tpu.memory_space<vmem>>, vector<1x128xf32>
    %11 = vector.broadcast %10 : vector<1x128xf32> to vector<8x128xf32>
    %12 = arith.addf %9, %11 : vector<8x128xf32>
    %c0_11 = arith.constant 0 : index
    %c0_12 = arith.constant 0 : index
    %13 = vector.load %arg6[%c0_11, %c0_12] : memref<8x128xf32, #tpu.memory_space<vmem>>, vector<8x128xf32>
    tpu.vector_store %arg6[%c0_11, %c0_12], %12 {strides = array<i32>} : memref<8x128xf32, #tpu.memory_space<vmem>>, vector<8x128xf32>,
    return
  }
  func.func @transform_0(%arg0: i32) -> (i32, i32) {
    %c0_i32 = arith.constant 0 : i32
    %c0_i32_0 = arith.constant 0 : i32
    return %arg0, %c0_i32 : i32, i32
  }
  func.func @transform_1(%arg0: i32) -> (i32, i32) {
    %c0_i32 = arith.constant 0 : i32
    %c0_i32_0 = arith.constant 0 : i32
    %c0_i32_1 = arith.constant 0 : i32
    return %c0_i32, %c0_i32_0 : i32, i32
  }
  func.func @transform_2(%arg0: i32) -> (i32, i32) {
    %c0_i32 = arith.constant 0 : i32
    %c0_i32_0 = arith.constant 0 : i32
    %c0_i32_1 = arith.constant 0 : i32
    return %c0_i32, %c0_i32_0 : i32, i32
  }
  func.func @transform_3(%arg0: i32) -> (i32, i32) {
    %c0_i32 = arith.constant 0 : i32
    %c0_i32_0 = arith.constant 0 : i32
    %c0_i32_1 = arith.constant 0 : i32
    return %c0_i32, %c0_i32_0 : i32, i32
  }
  func.func @transform_4(%arg0: i32) -> (i32, i32) {
    %c0_i32 = arith.constant 0 : i32
    %c0_i32_0 = arith.constant 0 : i32
    %c0_i32_1 = arith.constant 0 : i32
    return %c0_i32, %c0_i32_0 : i32, i32
  }
  func.func @transform_5(%arg0: i32) -> (i32, i32) {
    %c0_i32 = arith.constant 0 : i32
    %c0_i32_0 = arith.constant 0 : i32
    return %arg0, %c0_i32 : i32, i32
  }
}

</mosaic_0001>

<bundles_post_ra>
// kernel: tpu_custom_call.1
= control target key start
LH: loop header
LB: loop body
LE: loop exit
PB: predicated region body
PF: predicated region fallthrough
CT: control target
= control target key end

     0   :  { %10 = vsyncpa [#allocation3], 0  ;;  %s1714_s0 = inlined_call_operand.hbm [shape: f32[16,128], index: 0, kind: input, shape index: {}]   ;;  %s1715_s1 = inlined_call_operand.hbm [shape: f32[128,512], index: 1, kind: input, shape index: {}]   ;;  %s1716_s2 = inlined_call_operand.hbm [shape: f32[1,512], index: 2, kind: input, shape index: {}]   ;;  %s1717_s3 = inlined_call_operand.hbm [shape: f32[512,128], index: 3, kind: input, shape index: {}]   ;;  %s1718_s4 = inlined_call_operand.hbm [shape: f32[1,128], index: 4, kind: input, shape index: {}]   ;;  %s1719_s5 = inlined_call_operand.hbm [shape: f32[16,128], index: 5, kind: output, shape index: {}]  }
   0x1   :  { %12 = vsyncpa [#allocation3 + $0x1], 0 }
   0x2   :  { %13 = vsyncpa [#allocation6], 0 }
   0x3   :  { %14 = vsyncpa [#allocation9], 0 }
   0x4   :  { %15 = vsyncpa [#allocation4], 0 }
   0x5   :  { %17 = vsyncpa [#allocation4 + $0x1], 0  ;;  %s1431_s18 = smov 0   ;;  %s1433_s19 = smov 0  }
   0x6   :  { %s1435_s20 = smov 0   ;;  %s1437_s21 = smov 0  }
   0x7 LB: > { %s1390_s22 = smov [#allocation5]   ;;  %s1452_s24 = sadd.s32 4294967295, %s1388_s21   ;;  %s1388_s21 = sphi %s1437_s21, %s1743_s21   ;;  %s1384_s20 = sphi %s1435_s20, %s1742_s20   ;;  %s1380_s19 = sphi %s1433_s19, %s1741_s19   ;;  %s1376_s18 = sphi %s1431_s18, %s1740_s18  }
   0x8   : > { %s176_s23 = sshll.u32 %s1390_s22, 4  ;;  %p862_p0 = scmp.ge.s32.totalorder %s1388_s21, 1  ;;  %s1457_s23 = int_to_ptr.vmem [resolvable:$true] %s176_s23 }
   0x9   : > { %p1720_p1 = scmp.eq.s32.totalorder %s1452_s24, 0  ;;  %p164_p2 = scmp.lt.s32.totalorder %s1388_s21, 3 }
   0xa   : > { %s1391_s26 = smov [#allocation8]   ;;  %s1392_s29 = smov [#allocation7]  }
   0xb   : > { %p1459_p3 = pnand %p862_p0, %p164_p2  ;;  %s200_s27 = sshll.u32 %s1391_s26, 4  ;;  %s1472_s27 = int_to_ptr.vmem [resolvable:$true] %s200_s27 }
   0xc   : > { %s1474_s30 = sshll.u32 %s1392_s29, 4  ;;  %s1172_s8 = scalar_lea.hbm %s1715_s1, 8192  ;;  %s191_s30 = int_to_ptr.vmem [resolvable:$true] %s1474_s30 }
   0xd   : > { %s1723_s25 = scalar_select %p1459_p3, 1, 0 }
   0xe   : > { %p1100_p5 = pneg %p1459_p3  ;;  %p1173_p7 = scmp.ne.s32.totalorder %s1715_s1, %s1172_s8 }
   0xf   : > { %p1179_p11 = scmp.lt.u32.totalorder %s1172_s8, %s1715_s1 }
  0x10   : > { %p1468_p6 = pnand %p1100_p5, %p1720_p1 }
  0x12   : > { %p1484_p8 = pneg %p1468_p6 }
  0x14   : > { %p1175_p9 = pnand %p1484_p8, %p1173_p7 }
  0x16   : > { %p1176_p10 = pneg %p1175_p9 }
  0x18   : > { %p1181_p12 = pnand %p1179_p11, %p1176_p10 }
  0x1a   : > { %1184 = shalt.err (!%p1181_p12)
}
  0x1b   : > { %s1185_s14 = scalar_lea.vmem %s1457_s23, 8192  ;;  %p1193_p5 = scmp.lt.s32.totalorder %s1457_s23, %s1457_s23 }
  0x1c   : > { %p1186_p13 = scmp.ne.s32.totalorder %s1457_s23, %s1185_s14  ;;  %p1194_p4 = scmp.lt.s32.totalorder %s1185_s14, %s1185_s14 }
  0x1e   : > { %p1188_p0 = pnand %p1186_p13, %p1484_p8  ;;  %p1195_p7 = por %p1194_p4, %p1193_p5 }
  0x20   : > { %p1189_p2 = pneg %p1188_p0 }
  0x22   : > { %p1196_p9 = pnand %p1195_p7, %p1189_p2 }
  0x24   : > { %1199 = shalt.err (!%p1196_p9)
}
  0x25   : > { %s1393_s15 = smov 512   ;;  %s1394_s16 = smov 32  }
  0x26   : > { %1103 = dma.hbm_to_vmem [thread:$0]  (!%p1468_p6), %s1715_s1, 8192, %s1457_s23, [#allocation6], %s1393_s15, %s1393_s15, %s1394_s16  }
  0x27   : > { %s1200_s6 = scalar_lea.hbm %s1717_s3, 8192 }
  0x28   : > { %p1201_p4 = scmp.ne.s32.totalorder %s1717_s3, %s1200_s6  ;;  %p1207_p12 = scmp.lt.u32.totalorder %s1200_s6, %s1717_s3 }
  0x2a   : > { %p1203_p10 = pnand %p1201_p4, %p1484_p8 }
  0x2c   : > { %p1204_p11 = pneg %p1203_p10 }
  0x2e   : > { %p1209_p13 = pnand %p1207_p12, %p1204_p11 }
  0x30   : > { %1212 = shalt.err (!%p1209_p13)
}
  0x31   : > { %s1213_s23 = scalar_lea.vmem %s1472_s27, 8192  ;;  %p1221_p7 = scmp.lt.s32.totalorder %s1472_s27, %s1472_s27 }
  0x32   : > { %p1214_p0 = scmp.ne.s32.totalorder %s1472_s27, %s1213_s23  ;;  %p1222_p9 = scmp.lt.s32.totalorder %s1213_s23, %s1213_s23 }
  0x34   : > { %p1216_p2 = pnand %p1214_p0, %p1484_p8  ;;  %p1223_p4 = por %p1222_p9, %p1221_p7 }
  0x36   : > { %p1217_p5 = pneg %p1216_p2 }
  0x38   : > { %p1224_p10 = pnand %p1223_p4, %p1217_p5 }
  0x3a   : > { %1227 = shalt.err (!%p1224_p10)
}
  0x3b   : > { %s1395_s12 = smov 128   ;;  %s1396_s13 = smov 8  }
  0x3c   : > { %1109 = dma.hbm_to_vmem [thread:$0]  (!%p1468_p6), %s1717_s3, 8192, %s1472_s27, [#allocation9], %s1395_s12, %s1395_s12, %s1396_s13  }
  0x3d   : > { %s1228_s22 = scalar_lea.hbm %s1716_s2, 64 }
  0x3e   : > { %p1229_p11 = scmp.ne.s32.totalorder %s1716_s2, %s1228_s22  ;;  %p1235_p0 = scmp.lt.u32.totalorder %s1228_s22, %s1716_s2 }
  0x40   : > { %p1231_p12 = pnand %p1229_p11, %p1484_p8 }
  0x42   : > { %p1232_p13 = pneg %p1231_p12 }
  0x44   : > { %p1237_p2 = pnand %p1235_p0, %p1232_p13 }
  0x46   : > { %1240 = shalt.err (!%p1237_p2)
}
  0x47   : > { %s1241_s8 = scalar_lea.vmem %s191_s30, 64  ;;  %p1249_p4 = scmp.lt.s32.totalorder %s191_s30, %s191_s30 }
  0x48   : > { %p1242_p5 = scmp.ne.s32.totalorder %s191_s30, %s1241_s8  ;;  %p1250_p10 = scmp.lt.s32.totalorder %s1241_s8, %s1241_s8 }
  0x4a   : > { %p1244_p7 = pnand %p1242_p5, %p1484_p8  ;;  %p1251_p1 = por %p1250_p10, %p1249_p4 }
  0x4c   : > { %p1245_p9 = pneg %p1244_p7 }
  0x4e   : > { %p1252_p3 = pnand %p1251_p1, %p1245_p9 }
  0x50   : > { %1255 = shalt.err (!%p1252_p3)
}
  0x51   : > { %1106 = dma.hbm_to_vmem [thread:$0]  (!%p1468_p6), %s1716_s2, 64, %s191_s30, [#allocation6]  }
  0x52   : > { %s1397_s10 = smov [#allocation10]   ;;  %s1256_s14 = scalar_lea.hbm %s1718_s4, 16 }
  0x53   : > { %s214_s23 = sshll.u32 %s1397_s10, 4  ;;  %p1257_p11 = scmp.ne.s32.totalorder %s1718_s4, %s1256_s14  ;;  %s215_s23 = int_to_ptr.vmem [resolvable:$true] %s214_s23 }
  0x54   : > { %p1263_p12 = scmp.lt.u32.totalorder %s1256_s14, %s1718_s4 }
  0x55   : > { %p1259_p1 = pnand %p1257_p11, %p1484_p8 }
  0x57   : > { %p1260_p3 = pneg %p1259_p1 }
  0x59   : > { %p1265_p13 = pnand %p1263_p12, %p1260_p3 }
  0x5b   : > { %1268 = shalt.err (!%p1265_p13)
}
  0x5c   : > { %s1269_s30 = scalar_lea.vmem %s215_s23, 16  ;;  %s1276_s26 = scalar_lea.vmem %s215_s23, 32 }
  0x5d   : > { %p1270_p0 = scmp.ne.s32.totalorder %s215_s23, %s1269_s30  ;;  %p1277_p7 = scmp.lt.s32.totalorder %s215_s23, %s215_s23 }
  0x5e   : > { %p1278_p9 = scmp.lt.s32.totalorder %s1276_s26, %s1269_s30 }
  0x5f   : > { %p1272_p2 = pnand %p1270_p0, %p1484_p8 }
  0x60   : > { %p1279_p4 = por %p1278_p9, %p1277_p7 }
  0x61   : > { %p1273_p5 = pneg %p1272_p2 }
  0x63   : > { %p1280_p10 = pnand %p1279_p4, %p1273_p5 }
  0x65   : > { %1283 = shalt.err (!%p1280_p10)
}
  0x66   : > { %1112 = dma.hbm_to_vmem [thread:$0]  (!%p1468_p6), %s1718_s4, 16, %s215_s23, [#allocation9]  }
  0x67   : > { %s861_s11 = sadd.s32 4294967294, %s1388_s21   ;;  %s1567_s28 = sadd.s32 1, %s1388_s21  }
  0x68   : > { %s27_s7 = ssub.s32 %s1388_s21, %s1567_s28  ;;  %s30_s8 = sadd.s32 1, %s1384_s20 }
  0x69   : > { %p28_p8 = scmp.eq.s32.totalorder %s27_s7, 0  ;;  %p37_p11 = scmp.ne.s32.totalorder %s1384_s20, %s1380_s19 }
  0x6a   : > { %p38_p1 = scmp.eq.s32.totalorder %s1388_s21, 0  ;;  %p43_p3 = scmp.ne.s32.totalorder %s1380_s19, %s1376_s18 }
  0x6b   : > { %s1578_s27 = scalar_select %p28_p8, %s1384_s20, %s30_s8  }
  0x6c   : > { %p1580_p12 = por %p38_p1, %p37_p11  ;;  %p1727_p13 = scmp.eq.s32.totalorder %s1452_s24, 0 }
  0x6d   : > { %p151_p0 = scmp.eq.s32.totalorder %s1452_s24, 1  ;;  %p157_p2 = scmp.eq.s32.totalorder %s861_s11, 1 }
  0x6e   : > { %p1586_p6 = por %p1727_p13, %p43_p3  ;;  %p1125_p5 = scmp.lt.s32.totalorder %s1388_s21, 2 }
  0x6f   : > { %s225_s23 = sand.u32 1, %s1384_s20   ;;  %p1593_p7 = por %p151_p0, %p37_p11 }
  0x70   : > { %p1597_p9 = por %p157_p2, %p43_p3  ;;  %s868_s14 = sshll.u32 %s225_s23, 3 }
  0x71   : > { %s1729_s12 = scalar_select %p1593_p7, 1, 0 }
  0x72   : > { %s1730_s13 = scalar_select %p1597_p9, 1, 0 }
  0x73   : > { %s869_s15 = sshll.u32 %s1388_s21, 7  ;;  %s229_s30 = scalar_lea.vmem [#allocation2], %s868_s14 }
  0x74   : > { %s1605_s22 = scalar_lea.hbm %s1714_s0, %s869_s15  ;;  %s236_s26 = sshll.u32 %s229_s30, 4  ;;  %s1607_s26 = int_to_ptr.vmem [resolvable:$true] %s236_s26 }
  0x75   : > { %p1611_p4 = pnand %p1125_p5, %p1580_p12  ;;  %s226_s6 = scalar_lea.sflag [#allocation3], %s225_s23 }
  0x76   : > { %s1284_s11 = scalar_lea.hbm %s1605_s22, 128  ;;  %s1289_s14 = scalar_lea.hbm %s1714_s0, 256 }
  0x77   : > { %p1285_p10 = scmp.ne.s32.totalorder %s1605_s22, %s1284_s11  ;;  %p1286_p8 = pneg %p1611_p4 }
  0x78   : > { %p1290_p3 = scmp.lt.u32.totalorder %s1605_s22, %s1714_s0  ;;  %p1291_p12 = scmp.lt.u32.totalorder %s1289_s14, %s1284_s11 }
  0x79   : > { %p1287_p11 = pnand %p1286_p8, %p1285_p10  ;;  %p1293_p0 = scmp.lt.u32.totalorder %s1284_s11, %s1605_s22 }
  0x7a   : > { %p1292_p13 = por %p1291_p12, %p1290_p3 }
  0x7b   : > { %p1288_p1 = pneg %p1287_p11 }
  0x7c   : > { %p1294_p2 = por %p1293_p0, %p1292_p13 }
  0x7e   : > { %p1295_p5 = pnand %p1294_p2, %p1288_p1 }
  0x80   : > { %1298 = shalt.err (!%p1295_p5)
}
  0x81   : > { %s1299_s23 = scalar_lea.vmem %s1607_s26, 128  ;;  %s1398_s16 = smov [#allocation2]  }
  0x82   : > { %p1300_p10 = scmp.ne.s32.totalorder %s1607_s26, %s1299_s23  ;;  %s1304_s17 = sshll.u32 %s1398_s16, 4  ;;  %s1305_s17 = int_to_ptr.vmem [resolvable:$false] %s1304_s17 }
  0x83   : > { %s1306_s30 = scalar_lea.vmem %s1305_s17, 256  ;;  %p1307_p7 = scmp.lt.s32.totalorder %s1607_s26, %s1305_s17 }
  0x84   : > { %p1302_p11 = pnand %p1300_p10, %p1286_p8  ;;  %p1308_p3 = scmp.lt.s32.totalorder %s1306_s30, %s1299_s23 }
  0x86   : > { %p1303_p9 = pneg %p1302_p11  ;;  %p1309_p12 = por %p1308_p3, %p1307_p7 }
  0x88   : > { %p1310_p13 = pnand %p1309_p12, %p1303_p9 }
  0x8a   : > { %1313 = shalt.err (!%p1310_p13)
}
  0x8b   : > { %1116 = dma.hbm_to_vmem [thread:$0]  (!%p1611_p4), %s1605_s22, 128, %s1607_s26, %s226_s6  }
  0x8c   : > { %p1732_p1 = scmp.ne.s32.totalorder %s1723_s25, 0 }
  0x8d   : > { %s1643_s11 = sand.u32 (!%p1732_p1), 1, %s1380_s19  }
  0x8e   : > { %245 = sbr.rel (%p1732_p1) target bundleno = 643 (0x283), region = 40  ;;  %s871_s7 = sshll.u32 (!%p1732_p1), %s1643_s11, 3 }
  0x8f   : > { %s248_s8 = scalar_lea.sflag (!%p1732_p1), [#allocation3], %s1643_s11  ;;  %s1649_s14 = scalar_lea.vmem (!%p1732_p1), [#allocation2], %s871_s7 }
  0x95   : > { %1359 = dma.done.wait (%p1586_p6), %s248_s8, 128  }
  0x96   : > { %1361 = vsyncadd (%p1586_p6), %s248_s8, 4294967168  ;;  %p1733_p7 = scmp.eq.s32.totalorder %s1452_s24, 0 }
  0x98   : > { %1363 = dma.done.wait (%p1733_p7), [#allocation6], 8256   ;;  %p1734_p9 = pmov %p1733_p7 }
  0x99   : > { %p1735_p4 = pmov %p1733_p7 }
  0x9a   : > { %1365 = vsyncadd (%p1734_p9), [#allocation6], 4294959040 }
  0x9b   : > { %1367 = dma.done.wait (%p1735_p4), [#allocation9], 8208   ;;  %p1736_p8 = pmov %p1735_p4 }
  0x9c   : > { %v1399_v0 = vmov 0.0   ;;  %v296_v1 = vld [vmem:[#allocation5 + $0x8] sm:$0xff]  ;;  %v298_v3 = vld [vmem:[#allocation5 + $0x18] sm:$0xff]  ;;  %v295_v6 = vld [vmem:[#allocation5] sm:$0xff]  ;;  %s879_s25 = sshll.u32 %s1452_s24, 7  ;;  %s293_s10 = scalar_lea.vmem [#allocation11], %s871_s7 }
  0x9d   : > { %1369 = vsyncadd (%p1736_p8), [#allocation9], 4294959088  ;;  %445 = vmatprep.mubr.f32.mxu0 %v1399_v0  ;;  %516 = vmatprep.mubr.f32.mxu1 %v1399_v0  ;;  %v300_v2 = vld [vmem:[#allocation5 + $0x28] sm:$0xff]  ;;  %v302_v5 = vld [vmem:[#allocation5 + $0x38] sm:$0xff]  ;;  %s753_s22 = sshll.u32 %s293_s10, 4  ;;  %s1670_s6 = scalar_lea.hbm %s1719_s5, %s879_s25  ;;  %s1672_s22 = int_to_ptr.vmem [resolvable:$true] %s753_s22 }
  0x9e   : > { %v952_v4 = vpack.c.bf16 %v300_v2, %v296_v1  ;;  %v299_v7 = vld [vmem:[#allocation5 + $0x20] sm:$0xff]  ;;  %v984_v8 = vpack.c.bf16 %v302_v5, %v298_v3  ;;  %v297_v10 = vld [vmem:[#allocation5 + $0x10] sm:$0xff]  ;;  %v304_v12 = vld [vmem:[#allocation5 + $0x48] sm:$0xff]  ;;  %s740_s9 = scalar_lea.sflag [#allocation4], %s1643_s11  ;;  %s1314_s15 = scalar_lea.vmem %s1672_s22, 128 }
  0x9f   : > { %v954_v9 = vpack.c.bf16 %v299_v7, %v295_v6  ;;  %v301_v11 = vld [vmem:[#allocation5 + $0x30] sm:$0xff]  ;;  %v308_v14 = vld [vmem:[#allocation5 + $0x68] sm:$0xff]  ;;  %v306_v15 = vld [vmem:[#allocation5 + $0x58] sm:$0xff]  ;;  %p1315_p6 = scmp.ne.s32.totalorder %s1672_s22, %s1314_s15  ;;  %p1737_p0 = scmp.ne.s32.totalorder %s1729_s12, 0 }
  0xa0   : > { %953 = vmatprep.subr.bf16.mxu0 %v952_v4  ;;  %v986_v13 = vpack.c.bf16 %v301_v11, %v297_v10  ;;  %v310_v16 = vld [vmem:[#allocation5 + $0x78] sm:$0xff]  ;;  %985 = vmatprep.subr.bf16.mxu1 %v984_v8  ;;  %v956_v17 = vpack.c.bf16 %v308_v14, %v304_v12  ;;  %v303_v19 = vld [vmem:[#allocation5 + $0x40] sm:$0xff]  ;;  %v305_v21 = vld [vmem:[#allocation5 + $0x50] sm:$0xff]  ;;  %s1400_s24 = smov [#allocation11]  }
  0xa1   : > { %955 = vmatpush1.bf16.msra.mxu0 %v954_v9  ;;  %v988_v18 = vpack.c.bf16 %v310_v16, %v306_v15  ;;  %v307_v20 = vld [vmem:[#allocation5 + $0x60] sm:$0xff]  ;;  %v309_v23 = vld [vmem:[#allocation5 + $0x70] sm:$0xff]  ;;  %v312_v24 = vld [vmem:[#allocation5 + $0x88] sm:$0xff]  ;;  %p1316_p2 = pnand %p1315_p6, %p1737_p0  ;;  %s1318_s23 = sshll.u32 %s1400_s24, 4  ;;  %s1319_s23 = int_to_ptr.vmem [resolvable:$false] %s1318_s23 }
  0xa2   : > { %987 = vmatpush1.bf16.msra.mxu1 %v986_v13  ;;  %v958_v22 = vpack.c.bf16 %v307_v20, %v303_v19  ;;  %v316_v25 = vld [vmem:[#allocation5 + $0xa8] sm:$0xff]  ;;  %957 = vmatprep.subr.bf16.mxu0 %v956_v17  ;;  %v990_v26 = vpack.c.bf16 %v309_v23, %v305_v21  ;;  %v314_v28 = vld [vmem:[#allocation5 + $0x98] sm:$0xff]  ;;  %v311_v30 = vld [vmem:[#allocation5 + $0x80] sm:$0xff]  ;;  %s1320_s16 = scalar_lea.vmem %s1319_s23, 256  ;;  %p1321_p10 = scmp.lt.s32.totalorder %s1672_s22, %s1319_s23 }
  0xa3   : > { %989 = vmatprep.subr.bf16.mxu1 %v988_v18  ;;  %v960_v27 = vpack.c.bf16 %v316_v25, %v312_v24  ;;  %v318_v29 = vld [vmem:[#allocation5 + $0xb8] sm:$0xff]  ;;  %v315_v32 = vld [vmem:[#allocation5 + $0xa0] sm:$0xff]  ;;  %v313_v33 = vld [vmem:[#allocation5 + $0x90] sm:$0xff]  ;;  %p1317_p5 = pneg %p1316_p2  ;;  %p1322_p11 = scmp.lt.s32.totalorder %s1320_s16, %s1314_s15 }
  0xa4   : > { %v992_v31 = vpack.c.bf16 %v318_v29, %v314_v28  ;;  %v317_v34 = vld [vmem:[#allocation5 + $0xb0] sm:$0xff]  ;;  %v962_v35 = vpack.c.bf16 %v315_v32, %v311_v30  ;;  %v320_v36 = vld [vmem:[#allocation5 + $0xc8] sm:$0xff]  ;;  %v322_v38 = vld [vmem:[#allocation5 + $0xd8] sm:$0xff] }
  0xa5   : > { %959 = vmatpush1.bf16.msra.mxu0 %v958_v22  ;;  %v324_v37 = vld [vmem:[#allocation5 + $0xe8] sm:$0xff]  ;;  %v994_v39 = vpack.c.bf16 %v317_v34, %v313_v33  ;;  %v326_v41 = vld [vmem:[#allocation5 + $0xf8] sm:$0xff]  ;;  %v319_v42 = vld [vmem:[#allocation5 + $0xc0] sm:$0xff]  ;;  %p1323_p3 = por %p1322_p11, %p1321_p10 }
  0xa6   : > { %991 = vmatpush1.bf16.msra.mxu1 %v990_v26  ;;  %961 = vmatprep.subr.bf16.mxu0 %v960_v27  ;;  %v964_v40 = vpack.c.bf16 %v324_v37, %v320_v36  ;;  %v323_v43 = vld [vmem:[#allocation5 + $0xe0] sm:$0xff]  ;;  %v996_v44 = vpack.c.bf16 %v326_v41, %v322_v38  ;;  %v321_v45 = vld [vmem:[#allocation5 + $0xd0] sm:$0xff]  ;;  %v328_v47 = vld [vmem:[#allocation5 + $0x108] sm:$0xff] }
  0xa7   : > { %993 = vmatprep.subr.bf16.mxu1 %v992_v31  ;;  %v325_v46 = vld [vmem:[#allocation5 + $0xf0] sm:$0xff]  ;;  %v332_v48 = vld [vmem:[#allocation5 + $0x128] sm:$0xff]  ;;  %v330_v49 = vld [vmem:[#allocation5 + $0x118] sm:$0xff]  ;;  %v966_v51 = vpack.c.bf16 %v323_v43, %v319_v42  ;;  %p1324_p12 = pnand %p1323_p3, %p1317_p5 }
  0xa8   : > { %v334_v50 = vld [vmem:[#allocation5 + $0x138] sm:$0xff]  ;;  %v998_v52 = vpack.c.bf16 %v325_v46, %v321_v45  ;;  %v968_v53 = vpack.c.bf16 %v332_v48, %v328_v47  ;;  %v327_v54 = vld [vmem:[#allocation5 + $0x100] sm:$0xff]  ;;  %v329_v56 = vld [vmem:[#allocation5 + $0x110] sm:$0xff] }
  0xa9   : > { %963 = vmatpush1.bf16.msra.mxu0 %v962_v35  ;;  %v331_v55 = vld [vmem:[#allocation5 + $0x120] sm:$0xff]  ;;  %v1000_v57 = vpack.c.bf16 %v334_v50, %v330_v49  ;;  %v333_v58 = vld [vmem:[#allocation5 + $0x130] sm:$0xff]  ;;  %v336_v59 = vld [vmem:[#allocation5 + $0x148] sm:$0xff] }
  0xaa   : > { %995 = vmatpush1.bf16.msra.mxu1 %v994_v39  ;;  %965 = vmatprep.subr.bf16.mxu0 %v964_v40  ;;  %v340_v60 = vld [vmem:[#allocation5 + $0x168] sm:$0xff]  ;;  %v338_v61 = vld [vmem:[#allocation5 + $0x158] sm:$0xff]  ;;  %v970_v63 = vpack.c.bf16 %v331_v55, %v327_v54  ;;  %v1002_v0 = vpack.c.bf16 %v333_v58, %v329_v56  ;;  %v335_v2 = vld [vmem:[#allocation5 + $0x140] sm:$0xff] }
  0xab   : > { %997 = vmatprep.subr.bf16.mxu1 %v996_v44  ;;  %v342_v62 = vld [vmem:[#allocation5 + $0x178] sm:$0xff]  ;;  %v972_v1 = vpack.c.bf16 %v340_v60, %v336_v59  ;;  %v339_v3 = vld [vmem:[#allocation5 + $0x160] sm:$0xff]  ;;  %v337_v4 = vld [vmem:[#allocation5 + $0x150] sm:$0xff] }
  0xac   : > { %v1004_v5 = vpack.c.bf16 %v342_v62, %v338_v61  ;;  %v341_v6 = vld [vmem:[#allocation5 + $0x170] sm:$0xff]  ;;  %v344_v7 = vld [vmem:[#allocation5 + $0x188] sm:$0xff]  ;;  %v346_v9 = vld [vmem:[#allocation5 + $0x198] sm:$0xff]  ;;  %v974_v11 = vpack.c.bf16 %v339_v3, %v335_v2 }
  0xad   : > { %967 = vmatpush1.bf16.msra.mxu0 %v966_v51  ;;  %v348_v8 = vld [vmem:[#allocation5 + $0x1a8] sm:$0xff]  ;;  %v350_v10 = vld [vmem:[#allocation5 + $0x1b8] sm:$0xff]  ;;  %v1006_v12 = vpack.c.bf16 %v341_v6, %v337_v4  ;;  %v343_v14 = vld [vmem:[#allocation5 + $0x180] sm:$0xff] }
  0xae   : > { %999 = vmatpush1.bf16.msra.mxu1 %v998_v52  ;;  %969 = vmatprep.subr.bf16.mxu0 %v968_v53  ;;  %v976_v13 = vpack.c.bf16 %v348_v8, %v344_v7  ;;  %v347_v15 = vld [vmem:[#allocation5 + $0x1a0] sm:$0xff]  ;;  %v345_v16 = vld [vmem:[#allocation5 + $0x190] sm:$0xff]  ;;  %v1008_v17 = vpack.c.bf16 %v350_v10, %v346_v9  ;;  %v352_v19 = vld [vmem:[#allocation5 + $0x1c8] sm:$0xff] }
  0xaf   : > { %1001 = vmatprep.subr.bf16.mxu1 %v1000_v57  ;;  %v349_v18 = vld [vmem:[#allocation5 + $0x1b0] sm:$0xff]  ;;  %v356_v20 = vld [vmem:[#allocation5 + $0x1e8] sm:$0xff]  ;;  %v354_v21 = vld [vmem:[#allocation5 + $0x1d8] sm:$0xff]  ;;  %v978_v23 = vpack.c.bf16 %v347_v15, %v343_v14 }
  0xb0   : > { %v358_v22 = vld [vmem:[#allocation5 + $0x1f8] sm:$0xff]  ;;  %v1010_v24 = vpack.c.bf16 %v349_v18, %v345_v16  ;;  %v980_v25 = vpack.c.bf16 %v356_v20, %v352_v19  ;;  %v351_v26 = vld [vmem:[#allocation5 + $0x1c0] sm:$0xff]  ;;  %v353_v28 = vld [vmem:[#allocation5 + $0x1d0] sm:$0xff] }
  0xb1   : > { %971 = vmatpush1.bf16.msra.mxu0 %v970_v63  ;;  %v355_v27 = vld [vmem:[#allocation5 + $0x1e0] sm:$0xff]  ;;  %v1012_v29 = vpack.c.bf16 %v358_v22, %v354_v21  ;;  %v357_v30 = vld [vmem:[#allocation5 + $0x1f0] sm:$0xff] }
  0xb2   : > { %1003 = vmatpush1.bf16.msra.mxu1 %v1002_v0  ;;  %973 = vmatprep.subr.bf16.mxu0 %v972_v1  ;;  %v543_v31 = vld [vmem:[#allocation8 + $0x80] sm:$0xff]  ;;  %v544_v32 = vld [vmem:[#allocation8 + $0x88] sm:$0xff]  ;;  %v982_v35 = vpack.c.bf16 %v355_v27, %v351_v26  ;;  %v1014_v36 = vpack.c.bf16 %v357_v30, %v353_v28  ;;  %v545_v43 = vld [vmem:[#allocation8 + $0x90] sm:$0xff] }
  0xb3   : > { %1005 = vmatprep.subr.bf16.mxu1 %v1004_v5  ;;  %v575_v33 = vld [vmem:[#allocation8 + $0x180] sm:$0xff]  ;;  %v576_v34 = vld [vmem:[#allocation8 + $0x188] sm:$0xff]  ;;  %v1016_v37 = vpack.c.bf16 %v544_v32, %v543_v31  ;;  %v546_v44 = vld [vmem:[#allocation8 + $0x98] sm:$0xff] }
  0xb4   : > { %v527_v38 = vld [vmem:[#allocation8] sm:$0xff]  ;;  %v528_v39 = vld [vmem:[#allocation8 + $0x8] sm:$0xff]  ;;  %v1048_v41 = vpack.c.bf16 %v576_v34, %v575_v33  ;;  %v577_v45 = vld [vmem:[#allocation8 + $0x190] sm:$0xff]  ;;  %v1020_v50 = vpack.c.bf16 %v546_v44, %v545_v43 }
  0xb5   : > { %975 = vmatpush1.bf16.msra.mxu0 %v974_v11  ;;  %v559_v40 = vld [vmem:[#allocation8 + $0x100] sm:$0xff]  ;;  %v560_v42 = vld [vmem:[#allocation8 + $0x108] sm:$0xff]  ;;  %v578_v46 = vld [vmem:[#allocation8 + $0x198] sm:$0xff]  ;;  %v1018_v48 = vpack.c.bf16 %v528_v39, %v527_v38 }
  0xb6   : > { %1007 = vmatpush1.bf16.msra.mxu1 %v1006_v12  ;;  %977 = vmatprep.subr.bf16.mxu0 %v976_v13  ;;  %v294_v47 = vld [vmem:[%s1649_s14] sm:$0xff]  ;;  %v1050_v49 = vpack.c.bf16 %v560_v42, %v559_v40  ;;  %v1052_v54 = vpack.c.bf16 %v578_v46, %v577_v45  ;;  %v547_v56 = vld [vmem:[#allocation8 + $0xa0] sm:$0xff] }
  0xb7   : > { %1009 = vmatprep.subr.bf16.mxu1 %v1008_v17  ;;  %v529_v51 = vld [vmem:[#allocation8 + $0x10] sm:$0xff]  ;;  %v530_v52 = vld [vmem:[#allocation8 + $0x18] sm:$0xff]  ;;  %v548_v57 = vld [vmem:[#allocation8 + $0xa8] sm:$0xff] }
  0xb8   : > { %v561_v53 = vld [vmem:[#allocation8 + $0x110] sm:$0xff]  ;;  %v562_v55 = vld [vmem:[#allocation8 + $0x118] sm:$0xff]  ;;  %v579_v58 = vld [vmem:[#allocation8 + $0x1a0] sm:$0xff]  ;;  %v1022_v60 = vpack.c.bf16 %v530_v52, %v529_v51  ;;  %v1024_v62 = vpack.c.bf16 %v548_v57, %v547_v56 }
  0xb9   : > { %979 = vmatpush1.bf16.msra.mxu0 %v978_v23  ;;  %v580_v59 = vld [vmem:[#allocation8 + $0x1a8] sm:$0xff]  ;;  %v1054_v61 = vpack.c.bf16 %v562_v55, %v561_v53  ;;  %v531_v63 = vld [vmem:[#allocation8 + $0x20] sm:$0xff]  ;;  %v549_v4 = vld [vmem:[#allocation8 + $0xb0] sm:$0xff] }
  0xba   : > { %1011 = vmatpush1.bf16.msra.mxu1 %v1010_v24  ;;  %981 = vmatprep.subr.bf16.mxu0 %v980_v25  ;;  %v532_v0 = vld [vmem:[#allocation8 + $0x28] sm:$0xff]  ;;  %v563_v1 = vld [vmem:[#allocation8 + $0x120] sm:$0xff]  ;;  %v1056_v2 = vpack.c.bf16 %v580_v59, %v579_v58  ;;  %v550_v5 = vld [vmem:[#allocation8 + $0xb8] sm:$0xff] }
  0xbb   : > { %1013 = vmatprep.subr.bf16.mxu1 %v1012_v29  ;;  %v564_v3 = vld [vmem:[#allocation8 + $0x128] sm:$0xff]  ;;  %v581_v6 = vld [vmem:[#allocation8 + $0x1b0] sm:$0xff]  ;;  %v582_v7 = vld [vmem:[#allocation8 + $0x1b8] sm:$0xff]  ;;  %v1026_v8 = vpack.c.bf16 %v532_v0, %v531_v63  ;;  %v1028_v10 = vpack.c.bf16 %v550_v5, %v549_v4 }
  0xbc   : > { %v1058_v9 = vpack.c.bf16 %v564_v3, %v563_v1  ;;  %v533_v11 = vld [vmem:[#allocation8 + $0x30] sm:$0xff]  ;;  %v534_v12 = vld [vmem:[#allocation8 + $0x38] sm:$0xff]  ;;  %v1060_v14 = vpack.c.bf16 %v582_v7, %v581_v6  ;;  %v551_v16 = vld [vmem:[#allocation8 + $0xc0] sm:$0xff] }
  0xbd   : > { %983 = vmatpush1.bf16.msra.mxu0 %v982_v35  ;;  %v565_v13 = vld [vmem:[#allocation8 + $0x130] sm:$0xff]  ;;  %v566_v15 = vld [vmem:[#allocation8 + $0x138] sm:$0xff]  ;;  %v552_v17 = vld [vmem:[#allocation8 + $0xc8] sm:$0xff]  ;;  %v1030_v20 = vpack.c.bf16 %v534_v12, %v533_v11 }
  0xbe   : > { %1015 = vmatpush1.bf16.msra.mxu1 %v1014_v36  ;;  %1017 = vmatprep.subr.bf16.mxu0 %v1016_v37  ;;  %v583_v18 = vld [vmem:[#allocation8 + $0x1c0] sm:$0xff]  ;;  %v584_v19 = vld [vmem:[#allocation8 + $0x1c8] sm:$0xff]  ;;  %v1062_v21 = vpack.c.bf16 %v566_v15, %v565_v13  ;;  %v1032_v22 = vpack.c.bf16 %v552_v17, %v551_v16  ;;  %v553_v28 = vld [vmem:[#allocation8 + $0xd0] sm:$0xff] }
  0xbf   : > { %1049 = vmatprep.subr.bf16.mxu1 %v1048_v41  ;;  %v535_v23 = vld [vmem:[#allocation8 + $0x40] sm:$0xff]  ;;  %v536_v24 = vld [vmem:[#allocation8 + $0x48] sm:$0xff]  ;;  %v1064_v26 = vpack.c.bf16 %v584_v19, %v583_v18  ;;  %v554_v29 = vld [vmem:[#allocation8 + $0xd8] sm:$0xff] }
  0xc0   : > { %446 = vmatmul.mubr.f32.vlgmr.msra.gmra.mrb[0].mxu0 %v294_v47  ;;  %v567_v25 = vld [vmem:[#allocation8 + $0x140] sm:$0xff]  ;;  %v568_v27 = vld [vmem:[#allocation8 + $0x148] sm:$0xff]  ;;  %v585_v30 = vld [vmem:[#allocation8 + $0x1d0] sm:$0xff]  ;;  %v1034_v32 = vpack.c.bf16 %v536_v24, %v535_v23  ;;  %v1036_v34 = vpack.c.bf16 %v554_v29, %v553_v28 }
  0xc1   : > { %517 = vmatmul.mubr.f32.vlgmr.msra.gmra.mrb[0].mxu1 %v294_v47  ;;  %1019 = vmatpush3.bf16.msra.mxu0 %v1018_v48  ;;  %v586_v31 = vld [vmem:[#allocation8 + $0x1d8] sm:$0xff]  ;;  %v1066_v33 = vpack.c.bf16 %v568_v27, %v567_v25  ;;  %v537_v35 = vld [vmem:[#allocation8 + $0x50] sm:$0xff]  ;;  %v555_v40 = vld [vmem:[#allocation8 + $0xe0] sm:$0xff] }
  0xc2   : > { %1051 = vmatpush3.bf16.msra.mxu1 %v1050_v49  ;;  %1021 = vmatprep.subr.bf16.mxu0 %v1020_v50  ;;  %v538_v36 = vld [vmem:[#allocation8 + $0x58] sm:$0xff]  ;;  %v569_v37 = vld [vmem:[#allocation8 + $0x150] sm:$0xff]  ;;  %v1068_v38 = vpack.c.bf16 %v586_v31, %v585_v30  ;;  %v556_v41 = vld [vmem:[#allocation8 + $0xe8] sm:$0xff] }
  0xc3   : > { %1053 = vmatprep.subr.bf16.mxu1 %v1052_v54  ;;  %v570_v39 = vld [vmem:[#allocation8 + $0x158] sm:$0xff]  ;;  %v587_v42 = vld [vmem:[#allocation8 + $0x1e0] sm:$0xff]  ;;  %v588_v43 = vld [vmem:[#allocation8 + $0x1e8] sm:$0xff]  ;;  %v1038_v44 = vpack.c.bf16 %v538_v36, %v537_v35  ;;  %v1040_v46 = vpack.c.bf16 %v556_v41, %v555_v40 }
  0xc4   : > { %v1070_v45 = vpack.c.bf16 %v570_v39, %v569_v37  ;;  %v1072_v47 = vpack.c.bf16 %v588_v43, %v587_v42  ;;  %v539_v48 = vld [vmem:[#allocation8 + $0x60] sm:$0xff]  ;;  %v540_v49 = vld [vmem:[#allocation8 + $0x68] sm:$0xff]  ;;  %v557_v54 = vld [vmem:[#allocation8 + $0xf0] sm:$0xff] }
  0xc5   : > { %1023 = vmatpush3.bf16.msra.mxu0 %v1022_v60  ;;  %v571_v50 = vld [vmem:[#allocation8 + $0x160] sm:$0xff]  ;;  %v1042_v51 = vpack.c.bf16 %v540_v49, %v539_v48  ;;  %v572_v52 = vld [vmem:[#allocation8 + $0x168] sm:$0xff]  ;;  %v558_v55 = vld [vmem:[#allocation8 + $0xf8] sm:$0xff] }
  0xc6   : > { %1055 = vmatpush3.bf16.msra.mxu1 %v1054_v61  ;;  %1025 = vmatprep.subr.bf16.mxu0 %v1024_v62  ;;  %v1074_v53 = vpack.c.bf16 %v572_v52, %v571_v50  ;;  %v589_v56 = vld [vmem:[#allocation8 + $0x1f0] sm:$0xff]  ;;  %v1044_v57 = vpack.c.bf16 %v558_v55, %v557_v54  ;;  %v590_v58 = vld [vmem:[#allocation8 + $0x1f8] sm:$0xff]  ;;  %v877_v27 = vld [vmem:[#allocation10] ss:$0 sm:$0xff] }
  0xc7   : > { %1057 = vmatprep.subr.bf16.mxu1 %v1056_v2  ;;  %v541_v59 = vld [vmem:[#allocation8 + $0x70] sm:$0xff]  ;;  %v542_v60 = vld [vmem:[#allocation8 + $0x78] sm:$0xff]  ;;  %v1076_v61 = vpack.c.bf16 %v590_v58, %v589_v56  ;;  %v361_v2 = vlaneseq }
  0xc8   : > { %v1046_v62 = vpack.c.bf16 %v542_v60, %v541_v59  ;;  %v573_v63 = vld [vmem:[#allocation8 + $0x170] sm:$0xff]  ;;  %v574_v0 = vld [vmem:[#allocation8 + $0x178] sm:$0xff] }
  0xc9   : > { %1027 = vmatpush3.bf16.msra.mxu0 %v1026_v8  ;;  %v1078_v1 = vpack.c.bf16 %v574_v0, %v573_v63  ;;  %v362_v3 = vshrl.u32 %v361_v2, 7  ;;  %v359_v5 = vld [vmem:[#allocation7] sm:$0xf] }
  0xca   : > { %1059 = vmatpush3.bf16.msra.mxu1 %v1058_v9  ;;  %1029 = vmatprep.subr.bf16.mxu0 %v1028_v10 }
  0xcb   : > { %1061 = vmatprep.subr.bf16.mxu1 %v1060_v14  ;;  %v363_v4 = vsub.s32 0, %v362_v3  ;;  %v371_v6 = vsub.s32 2, %v362_v3  ;;  %v367_v7 = vsub.s32 1, %v362_v3  ;;  %v375_v8 = vsub.s32 3, %v362_v3 }
  0xcd   : > { %1031 = vmatpush3.bf16.msra.mxu0 %v1030_v20  ;;  %v364_v9 = vrot.slane %v359_v5, %v363_v4  ;;  %v372_v10 = vrot.slane %v359_v5, %v371_v6  ;;  %v368_v11 = vrot.slane %v359_v5, %v367_v7  ;;  %v376_v12 = vrot.slane %v359_v5, %v375_v8 }
  0xce   : > { %1063 = vmatpush3.bf16.msra.mxu1 %v1062_v21  ;;  %1033 = vmatprep.subr.bf16.mxu0 %v1032_v22 }
  0xcf   : > { %1065 = vmatprep.subr.bf16.mxu1 %v1064_v26 }
  0xd1   : > { %1035 = vmatpush3.bf16.msra.mxu0 %v1034_v32 }
  0xd2   : > { %1067 = vmatpush3.bf16.msra.mxu1 %v1066_v33  ;;  %1037 = vmatprep.subr.bf16.mxu0 %v1036_v34 }
  0xd3   : > { %1069 = vmatprep.subr.bf16.mxu1 %v1068_v38 }
  0xd5   : > { %1039 = vmatpush3.bf16.msra.mxu0 %v1038_v44 }
  0xd6   : > { %1071 = vmatpush3.bf16.msra.mxu1 %v1070_v45  ;;  %1041 = vmatprep.subr.bf16.mxu0 %v1040_v46 }
  0xd7   : > { %1073 = vmatprep.subr.bf16.mxu1 %v1072_v47 }
  0xd9   : > { %1043 = vmatpush3.bf16.msra.mxu0 %v1042_v51 }
  0xda   : > { %1075 = vmatpush3.bf16.msra.mxu1 %v1074_v53  ;;  %1045 = vmatprep.subr.bf16.mxu0 %v1044_v57 }
  0xdb   : > { %1077 = vmatprep.subr.bf16.mxu1 %v1076_v61 }
  0xdd   : > { %1047 = vmatpush3.bf16.msra.mxu0 %v1046_v62 }
  0xde   : > { %1079 = vmatpush3.bf16.msra.mxu1 %v1078_v1 }
 0x193   : > { %v447_v13 = vpop.f32.mrb[0].mxu0 }
 0x194   : > { %v448_v14 = vadd.f32 %v447_v13, %v364_v9  ;;  %v518_v15 = vpop.f32.mrb[0].mxu1  ;;  %v449_v16 = vpop.f32.mrb[1].mxu0 }
 0x195   : > { %v519_v17 = vadd.f32 %v518_v15, %v372_v10  ;;  %v450_v18 = vadd.f32 %v449_v16, %v368_v11  ;;  %v520_v19 = vpop.f32.mrb[1].mxu1 }
 0x196   : > { %v521_v20 = vadd.f32 %v520_v19, %v376_v12  ;;  %v523_v23 = vmax.f32 %v448_v14, 0.0 }
 0x197   : > { %v525_v21 = vmax.f32 %v519_v17, 0.0  ;;  %v524_v22 = vmax.f32 %v450_v18, 0.0 }
 0x198   : > { %v526_v24 = vmax.f32 %v521_v20, 0.0 }
 0x199   : > { %662 = vmatprep.mubr.f32.mxu0 %v524_v22 }
 0x19a   : > { %732 = vmatprep.mubr.f32.mxu1 %v526_v24  ;;  %663 = vmatmul.mubr.f32.vlgmr.msra.gmra.mrb[2].mxu0 %v523_v23 }
 0x19b   : > { %733 = vmatmul.mubr.f32.vlgmr.msra.gmra.mrb[2].mxu1 %v525_v21 }
 0x26d   : > { %v914_v25 = vpop.f32.mrb[2].mxu0 }
 0x26e   : > { %v949_v26 = vpop.f32.mrb[2].mxu1  ;;  %v915_v28 = vpop.f32.mrb[3].mxu0 }
 0x26f   : > { %v916_v29 = vadd.f32 %v915_v28, %v914_v25  ;;  %v950_v30 = vpop.f32.mrb[3].mxu1 }
 0x270   : > { %v951_v31 = vadd.f32 %v950_v30, %v949_v26 }
 0x271   : > { %v665_v32 = vadd.f32 %v916_v29, %v877_v27 }
 0x273   : > { %v735_v33 = vadd.f32 %v951_v31, %v665_v32 }
 0x275   : > { %738 = vst [vmem:[%s293_s10] sm:$0xff] %v735_v33 }
 0x276   : > { %1327 = shalt.err (!%p1324_p12)
}
 0x277   : > { %s1328_s17 = scalar_lea.hbm %s1670_s6, 128  ;;  %s1332_s7 = scalar_lea.hbm %s1719_s5, 256 }
 0x278   : > { %p1329_p13 = scmp.ne.s32.totalorder %s1670_s6, %s1328_s17  ;;  %p1333_p9 = scmp.lt.u32.totalorder %s1670_s6, %s1719_s5 }
 0x279   : > { %p1334_p4 = scmp.lt.u32.totalorder %s1332_s7, %s1328_s17  ;;  %p1336_p6 = scmp.lt.u32.totalorder %s1328_s17, %s1670_s6 }
 0x27a   : > { %p1330_p1 = pnand %p1329_p13, %p1737_p0 }
 0x27b   : > { %p1335_p8 = por %p1334_p4, %p1333_p9 }
 0x27c   : > { %p1331_p7 = pneg %p1330_p1 }
 0x27d   : > { %p1337_p2 = por %p1336_p6, %p1335_p8 }
 0x27f   : > { %p1338_p5 = pnand %p1337_p2, %p1331_p7 }
 0x281   : > { %1341 = shalt.err (!%p1338_p5)
}
 0x282   : > { %1098 = dma.vmem_to_hbm [thread:$0]  (%p1737_p0), %s1672_s22, 128, %s1670_s6, %s740_s9  }
 0x283 PF: > { %s765_s25 = sand.u32 1, %s1376_s18   ;;  %p1738_p10 = scmp.ne.s32.totalorder %s1730_s13, 0 }
 0x284   : > { %p1739_p11 = scmp.ge.s32.totalorder %s1388_s21, 2  ;;  %s766_s10 = scalar_lea.sflag [#allocation4], %s765_s25 }
 0x286   : > { %p1118_p3 = pnand %p1739_p11, %p1738_p10 }
 0x288   : > { %1371 = dma.done.wait (!%p1118_p3), %s766_s10, 128  }
 0x289   : > { %1373 = vsyncadd (!%p1118_p3), %s766_s10, 4294967168  ;;  %p20_p12 = scmp.ge.s32.totalorder %s1567_s28, 4   ;;  %s1740_s18 = smov %s1380_s19 }
 0x28a   : > { %s1741_s19 = smov %s1384_s20  ;;  %s1742_s20 = smov %s1578_s27 }
 0x28b   : > { %s1743_s21 = smov %s1567_s28  ;;  %22 = sbr.rel (!%p20_p12) target bundleno = 7 (0x7), region = 101 }
 0x292   :  { %771 = vsyncpa [#allocation3], 1 }
 0x293   :  { %773 = vsyncpa [#allocation3 + $0x1], 1 }
 0x294   :  { %774 = vsyncpa [#allocation6], 1 }
 0x295   :  { %775 = vsyncpa [#allocation9], 1 }
 0x296   :  { %776 = vsyncpa [#allocation4], 1 }
 0x297   :  { %778 = vsyncpa [#allocation4 + $0x1], 1 }

</bundles_post_ra>
